<compile_context>
chip_gen: v7x
topology: tpu7x:2x2x1
jax: 0.10.0
libtpu: 0.0.40
codegen_flags: <defaults>
</compile_context>

<pallas_src>
import math

import jax
import jax.numpy as jnp
from jax.experimental import pallas as pl
from jax.experimental.pallas import tpu as pltpu


# --------------------------------------------------------------------------- kernel
def _pe_add_kernel(x_ref, pe_ref, o_ref):
    # x_ref : (tile_l, tile_b, D)
    # pe_ref: (tile_l, 1,      D)  -> broadcast over the batch (sublane) axis; the VPU
    # sees this as a plain elementwise add, the replication is free vreg/sublane copies.
    o_ref[...] = x_ref[...] + pe_ref[...]


# ------------------------------------------------------------------------ utilities
def _round_up(n: int, m: int) -> int:
    return ((n + m - 1) // m) * m


def _tpu_params():
    """Best-effort chip query -> (tensorcores_per_chip, target_block_bytes, vmem_limit_bytes|None)."""
    kind = ""
    try:
        kind = jax.devices()[0].device_kind.lower()
    except Exception:
        pass
    vmem_cap = None
    try:
        vmem_cap = int(pltpu.get_tpu_info().vmem_capacity_bytes)
    except Exception:
        pass

    if "v7" in kind:
        # v7x: 2 TCs/chip, 64 MiB physical VMEM per TC, ~3.2 TB/s HBM.  ~6 MiB blocks
        # push the per-grid-step overhead below 10% of step time; the resulting peak
        # (~36 MiB double-buffered) exceeds the 32 MiB scoped default -> raise it.
        limit = 48 << 20
        if vmem_cap:
            limit = min(limit, (vmem_cap * 3) // 4)
        return 2, 6 << 20, limit
    if "v6" in kind:
        # v6e: 1 TC, 128 MiB VMEM, 32 MiB scoped default.  2-4 MiB blocks already sit at
        # ~85% of the HBM roofline; keep defaults.
        return 1, 3 << 20, None
    # v5e and unknown chips: 1 TC, 16 MiB scoped VMEM default -> keep ~2 MiB blocks
    # (peak ~12 MiB double-buffered) and do not touch the limit.
    return 1, 2 << 20, None


def _choose_tiles(L: int, B: int, D: int, dtype, *, cores: int, target_bytes: int):
    """Pick (tile_l, tile_b) for 3-D blocks (tile_l, tile_b, D), budgeting PADDED VMEM."""
    itemsize = jnp.dtype(dtype).itemsize
    sgran = max(8, 32 // itemsize)          # sublane granule: 8 (f32) / 16 (bf16) / 32 (int8)
    d_pad = _round_up(D, 128)               # lane padding of the trailing dim

    def blk_bytes(tl, tb):                  # padded VMEM footprint of one block
        return tl * _round_up(tb, sgran) * d_pad * itemsize

    # Huge-row guard: even an 8-row, full-batch block must respect the block budget,
    # otherwise tile the batch axis too (keeps blocks bounded under v7x's 64 MiB VMEM
    # and keeps double buffering alive).
    tile_b = B
    if blk_bytes(8, B) > target_bytes and B > sgran:
        tile_b = max(sgran, (target_bytes // (8 * d_pad * itemsize)) // sgran * sgran)
        # TODO(synk): if B <= sgran but 8*B*D is still enormous, d_model itself would need
        # tiling; not required for realistic trajectory-encoder shapes.

    # Sequence tile: as big as the budget allows (fewer grid steps = less per-step overhead).
    tile_l = max(8, (target_bytes // max(blk_bytes(1, tile_b), 1)) // 8 * 8)
    tile_l = min(tile_l, _round_up(L, 8))

    # Core-count-aware split: >= 2 L-blocks per TensorCore on multi-core chips (v7x) so each
    # core's per-core double buffering has work to overlap; never force a split on 1-TC chips.
    if cores > 1:
        n_b = pl.cdiv(B, tile_b)
        want_l = pl.cdiv(2 * cores, n_b)
        if pl.cdiv(L, tile_l) < want_l and L > 8:
            tile_l = max(8, (L // want_l) // 8 * 8)

    return tile_l, tile_b


# ---------------------------------------------------------------------- PE building
def make_positional_encoding(d_model: int, max_len: int = 5000) -> jnp.ndarray:
    """Sinusoidal PE table, float32, shape (max_len, d_model) -- same math as the PyTorch __init__."""
    assert d_model % 2 == 0, "sinusoidal PE requires even d_model (same as the PyTorch module)"
    position = jnp.arange(max_len, dtype=jnp.float32)[:, None]                 # (max_len, 1)
    div_term = jnp.exp(jnp.arange(0, d_model, 2, dtype=jnp.float32)
                       * (-math.log(10000.0) / d_model))                        # (d_model//2,)
    angles = position * div_term                                                # (max_len, d_model//2)
    pe = jnp.zeros((max_len, d_model), jnp.float32)
    pe = pe.at[:, 0::2].set(jnp.sin(angles))
    pe = pe.at[:, 1::2].set(jnp.cos(angles))
    return pe


# -------------------------------------------------------------------------- forward
def positional_encoding_forward(x: jnp.ndarray, pe: jnp.ndarray, *,
                                tile_l: int | None = None,
                                tile_b: int | None = None,
                                inplace: bool = False) -> jnp.ndarray:
    """x: (L, B, d_model); pe: (max_len, d_model) or (max_len, 1, d_model), max_len >= L.

    Returns x + pe[:L] (broadcast over batch).  Pass pe already in x.dtype (the
    PositionalEncoding class caches it that way) so the per-call path has no extra kernels.
    """
    L, B, D = x.shape
    max_len = pe.shape[0]
    assert max_len >= L and pe.shape[-1] == D
    # No-ops when pe is already (max_len, 1, D) in x.dtype (the cached-class path).
    pe3 = pe.reshape(max_len, 1, D).astype(x.dtype)

    cores, target_bytes, vmem_limit = _tpu_params()
    if tile_l is None or tile_b is None:
        tl, tb = _choose_tiles(L, B, D, x.dtype, cores=cores, target_bytes=target_bytes)
        tile_l = tl if tile_l is None else tile_l
        tile_b = tb if tile_b is None else tile_b

    grid = (pl.cdiv(L, tile_l), pl.cdiv(B, tile_b))

    cp_kwargs = dict(dimension_semantics=("parallel", "parallel"))
    if vmem_limit is not None:
        cp_kwargs["vmem_limit_bytes"] = int(vmem_limit)

    call_kwargs = {}
    if inplace:
        # Output reuses x's HBM buffer (truly zero-copy when x is donated at the jit boundary).
        call_kwargs["input_output_aliases"] = {0: 0}

    out = pl.pallas_call(
        _pe_add_kernel,
        out_shape=jax.ShapeDtypeStruct((L, B, D), x.dtype),
        grid_spec=pltpu.PrefetchScalarGridSpec(
            num_scalar_prefetch=0,
            grid=grid,
            in_specs=[
                pl.BlockSpec((tile_l, tile_b, D), lambda i, j: (i, j, 0)),   # x tile
                pl.BlockSpec((tile_l, 1, D), lambda i, j: (i, 0, 0)),        # matching PE rows
            ],
            out_specs=pl.BlockSpec((tile_l, tile_b, D), lambda i, j: (i, j, 0)),
        ),
        compiler_params=pltpu.CompilerParams(**cp_kwargs),
        **call_kwargs,
    )(x, pe3)

    # TODO(synk): nn.Dropout(p=0.1) is identity in eval mode; training-mode stochastic dropout
    # (and matching PyTorch's RNG stream) is intentionally not reproduced here.
    return out


class PositionalEncoding:
    """JAX/Pallas counterpart of the PyTorch module (forward only; dropout = eval-mode identity)."""

    def __init__(self, d_model: int, max_len: int = 5000, dropout: float = 0.1,
                 dtype=jnp.float32):
        del dropout  # identity in eval mode
        # Built once in float32 (matches the PyTorch float32 buffer), cast ONCE to the model
        # dtype and cached as (max_len, 1, d_model) -> nothing to cast/slice/reshape per call.
        pe32 = make_positional_encoding(d_model, max_len)
        self.pe = pe32.astype(dtype)[:, None, :]            # (max_len, 1, d_model)

    def __call__(self, x: jnp.ndarray, *, inplace: bool = False) -> jnp.ndarray:
        return positional_encoding_forward(x, self.pe, inplace=inplace)


# ----------------------------------------------------------------------------- test
if __name__ == "__main__":
    key = jax.random.PRNGKey(0)
    k1, k2, k3 = jax.random.split(key, 3)

    # Case 1: small shapes consistent with the module (seq=8, batch=2, d_model=32), f32.
    mod = PositionalEncoding(d_model=32, max_len=64)
    x1 = jax.random.normal(k1, (8, 2, 32), dtype=jnp.float32)
    y1 = jax.block_until_ready(mod(x1))
    ref1 = x1 + mod.pe[:8]
    assert y1.shape == x1.shape and y1.dtype == x1.dtype
    assert jnp.allclose(y1, ref1, atol=1e-6, rtol=1e-6)

    # Case 2: ragged sequence (L=12) with a forced 8-row tile -> masked last block.
    x2 = jax.random.normal(k2, (12, 3, 32), dtype=jnp.float32)
    y2 = jax.block_until_ready(positional_encoding_forward(x2, mod.pe, tile_l=8))
    assert jnp.allclose(y2, x2 + mod.pe[:12], atol=1e-6, rtol=1e-6)

    # Case 3: lane-dense d_model (128) in bfloat16, with output aliased onto x.
    mod_bf16 = PositionalEncoding(d_model=128, max_len=64, dtype=jnp.bfloat16)
    x3 = jax.random.normal(k3, (16, 2, 128), dtype=jnp.bfloat16)
    ref3 = x3 + mod_bf16.pe[:16]
    y3 = jax.block_until_ready(mod_bf16(x3, inplace=True))
    assert y3.shape == x3.shape and y3.dtype == jnp.bfloat16
    assert jnp.allclose(y3.astype(jnp.float32), ref3.astype(jnp.float32), atol=1e-2, rtol=1e-2)

    print("KERNEL_OK")
</pallas_src>

<mosaic_0001>
module attributes {stable_mosaic.version = 11 : i64} {
  func.func @_pe_add_kernel(%arg0: i32, %arg1: i32, %arg2: memref<8x2x32xf32, #tpu.memory_space<vmem>>, %arg3: memref<8x1x32xf32, #tpu.memory_space<vmem>>, %arg4: memref<8x2x32xf32, #tpu.memory_space<vmem>>) attributes {dimension_semantics = [#tpu.dimension_semantics<parallel>, #tpu.dimension_semantics<parallel>], iteration_bounds = array<i64: 1, 1>, scalar_prefetch = 0 : i64, scratch_operands = 0 : i64, tpu.core_type = #tpu.core_type<tc>, window_params = [{transform_indices = @transform_0, window_bounds = array<i64: 8, 2, 32>}, {transform_indices = @transform_1, window_bounds = array<i64: 8, 1, 32>}, {transform_indices = @transform_2, window_bounds = array<i64: 8, 2, 32>}]} {
    %c0 = arith.constant 0 : index
    %c0_0 = arith.constant 0 : index
    %c0_1 = arith.constant 0 : index
    %0 = vector.load %arg2[%c0, %c0_0, %c0_1] : memref<8x2x32xf32, #tpu.memory_space<vmem>>, vector<8x2x32xf32>
    %c0_2 = arith.constant 0 : index
    %c0_3 = arith.constant 0 : index
    %c0_4 = arith.constant 0 : index
    %1 = vector.load %arg3[%c0_2, %c0_3, %c0_4] : memref<8x1x32xf32, #tpu.memory_space<vmem>>, vector<8x1x32xf32>
    %2 = vector.broadcast %1 : vector<8x1x32xf32> to vector<8x2x32xf32>
    %3 = arith.addf %0, %2 : vector<8x2x32xf32>
    %c0_5 = arith.constant 0 : index
    %c0_6 = arith.constant 0 : index
    %c0_7 = arith.constant 0 : index
    %4 = vector.load %arg4[%c0_5, %c0_6, %c0_7] : memref<8x2x32xf32, #tpu.memory_space<vmem>>, vector<8x2x32xf32>
    tpu.vector_store %arg4[%c0_5, %c0_6, %c0_7], %3 {strides = array<i32>} : memref<8x2x32xf32, #tpu.memory_space<vmem>>, vector<8x2x32xf32>,
    return
  }
  func.func @transform_0(%arg0: i32, %arg1: i32) -> (i32, i32, i32) {
    %c0_i32 = arith.constant 0 : i32
    %c0_i32_0 = arith.constant 0 : i32
    return %arg0, %arg1, %c0_i32 : i32, i32, i32
  }
  func.func @transform_1(%arg0: i32, %arg1: i32) -> (i32, i32, i32) {
    %c0_i32 = arith.constant 0 : i32
    %c0_i32_0 = arith.constant 0 : i32
    %c0_i32_1 = arith.constant 0 : i32
    return %arg0, %c0_i32, %c0_i32_0 : i32, i32, i32
  }
  func.func @transform_2(%arg0: i32, %arg1: i32) -> (i32, i32, i32) {
    %c0_i32 = arith.constant 0 : i32
    %c0_i32_0 = arith.constant 0 : i32
    return %arg0, %arg1, %c0_i32 : i32, i32, i32
  }
}

</mosaic_0001>

<bundles_post_ra>
// kernel: tpu_custom_call.1
= control target key start
LH: loop header
LB: loop body
LE: loop exit
PB: predicated region body
PF: predicated region fallthrough
CT: control target
= control target key end

     0   :  { %vm84_vm0 = vcmask 254976   ;;  %s230_s0 = inlined_call_operand.vmem [shape: f32[8,2,32], index: 0, kind: input, shape index: {}]   ;;  %s231_s1 = inlined_call_operand.vmem [shape: f32[64,1,32], index: 1, kind: input, shape index: {}]   ;;  %s232_s2 = inlined_call_operand.hbm [shape: f32[8,2,32], index: 2, kind: output, shape index: {}]  }
   0x1   :  { %v12_v0 = vld [vmem:[%s230_s0] sm:$0x3]  ;;  %v13_v3 = vld [vmem:[%s230_s0 + $0x2] sm:$0x3]  ;;  %v14_v5 = vld [vmem:[%s230_s0 + $0x4] sm:$0x3] }
   0x2   :  { %v109_v1 = vld [vmem:[%s231_s1] ss:$0 sm:$0xff]  ;;  %v110_v4 = vld [vmem:[%s231_s1 + $0x1] ss:$0 sm:$0xff]  ;;  %v111_v7 = vld [vmem:[%s231_s1 + $0x2] ss:$0 sm:$0xff] }
   0x3   :  { %v76_v2 = vadd.f32 %v109_v1, %v12_v0  ;;  %v77_v6 = vadd.f32 %v110_v4, %v13_v3  ;;  %v15_v8 = vld [vmem:[%s230_s0 + $0x6] sm:$0x3]  ;;  %v112_v9 = vld [vmem:[%s231_s1 + $0x3] ss:$0 sm:$0xff]  ;;  %v78_v10 = vadd.f32 %v111_v7, %v14_v5  ;;  %v16_v12 = vld [vmem:[%s230_s0 + $0x8] sm:$0x3] }
   0x4   :  { %v79_v11 = vadd.f32 %v112_v9, %v15_v8  ;;  %v113_v13 = vld [vmem:[%s231_s1 + $0x4] ss:$0 sm:$0xff]  ;;  %v17_v14 = vld [vmem:[%s230_s0 + $0xa] sm:$0x3]  ;;  %v114_v16 = vld [vmem:[%s231_s1 + $0x5] ss:$0 sm:$0xff] }
   0x5   :  { %85 = vst.msk [vmem:[#allocation2] sm:$0x3] %vm84_vm0, %v76_v2  ;;  %86 = vst.msk [vmem:[#allocation2 + $0x2] sm:$0x3] %vm84_vm0, %v77_v6  ;;  %v80_v15 = vadd.f32 %v113_v13, %v16_v12  ;;  %v18_v17 = vld [vmem:[%s230_s0 + $0xc] sm:$0x3]  ;;  %v81_v19 = vadd.f32 %v114_v16, %v17_v14 }
   0x6   :  { %v115_v18 = vld [vmem:[%s231_s1 + $0x6] ss:$0 sm:$0xff]  ;;  %87 = vst.msk [vmem:[#allocation2 + $0x4] sm:$0x3] %vm84_vm0, %v78_v10  ;;  %88 = vst.msk [vmem:[#allocation2 + $0x6] sm:$0x3] %vm84_vm0, %v79_v11 }
   0x7   :  { %v82_v20 = vadd.f32 %v115_v18, %v18_v17  ;;  %v19_v21 = vld [vmem:[%s230_s0 + $0xe] sm:$0x3]  ;;  %v116_v22 = vld [vmem:[%s231_s1 + $0x7] ss:$0 sm:$0xff] }
   0x8   :  { %7 = vsyncpa [#allocation3], 0  ;;  %89 = vst.msk [vmem:[#allocation2 + $0x8] sm:$0x3] %vm84_vm0, %v80_v15  ;;  %v83_v23 = vadd.f32 %v116_v22, %v19_v21  ;;  %s144_s13 = smov [#allocation2]  }
   0x9   :  { %s98_s14 = sshll.u32 %s144_s13, 4  ;;  %90 = vst.msk [vmem:[#allocation2 + $0xa] sm:$0x3] %vm84_vm0, %v81_v19  ;;  %91 = vst.msk [vmem:[#allocation2 + $0xc] sm:$0x3] %vm84_vm0, %v82_v20  ;;  %s99_s14 = int_to_ptr.vmem [resolvable:$true] %s98_s14 }
   0xa   :  { %92 = vst.msk [vmem:[#allocation2 + $0xe] sm:$0x3] %vm84_vm0, %v83_v23  ;;  %s120_s15 = scalar_lea.vmem %s99_s14, 256  ;;  %p125_p1 = scmp.lt.s32.totalorder %s99_s14, %s99_s14 }
   0xb   :  { %p121_p0 = scmp.ne.s32.totalorder %s99_s14, %s120_s15  ;;  %p126_p2 = scmp.lt.s32.totalorder %s120_s15, %s120_s15 }
   0xd   :  { %p127_p3 = por %p126_p2, %p125_p1 }
   0xf   :  { %p128_p4 = pnand %p127_p3, %p121_p0 }
  0x11   :  { %131 = shalt.err (!%p128_p4)
}
  0x12   :  { %s132_s16 = scalar_lea.hbm %s232_s2, 256 }
  0x13   :  { %p133_p5 = scmp.ne.s32.totalorder %s232_s2, %s132_s16  ;;  %p136_p6 = scmp.lt.u32.totalorder %s132_s16, %s232_s2 }
  0x15   :  { %p138_p7 = pnand %p136_p6, %p133_p5 }
  0x17   :  { %141 = shalt.err (!%p138_p7)
}
  0x18   :  { %s145_s21 = smov 32   ;;  %s146_s22 = smov 2  }
  0x19   :  { %104 = dma.vmem_to_hbm [thread:$0]  %s99_s14, 256, %s232_s2, [#allocation3], %s145_s21, %s145_s21, %s146_s22  }
  0x1a   :  { %142 = dma.done.wait [#allocation3], 256  }
  0x1b   :  { %143 = vsyncadd [#allocation3], 4294967040 }
  0x1c   :  { %108 = vsyncpa [#allocation3], 1 }

</bundles_post_ra>
